<compile_context>
chip_gen: v7x
topology: tpu7x:2x2x1
jax: 0.10.0
libtpu: 0.0.40
codegen_flags: <defaults>
</compile_context>

<pallas_src>
import functools

import jax
import jax.numpy as jnp
from jax.experimental import pallas as pl
from jax.experimental.pallas import tpu as pltpu


def _gru_cell_kernel(x_ref, h_ref, wx_ref, wh_ref, b_ref, out_ref,
                     *, update_bias):
    # x_ref: (TM, inp_size) tile, h_ref: (TM, size) tile.
    w_dtype = wx_ref.dtype
    h = h_ref[...]

    # parts = [x ; h] @ W + b, computed as a fused split matmul (no concat).
    # Matmul in the weight dtype (bf16 by default), f32 accumulation.
    parts = jnp.dot(x_ref[...].astype(w_dtype), wx_ref[...],
                    preferred_element_type=jnp.float32)
    parts = parts + jnp.dot(h.astype(w_dtype), wh_ref[...],
                            preferred_element_type=jnp.float32)
    parts = parts + b_ref[...]                          # f32 bias, row-broadcast

    size = out_ref.shape[-1]
    reset = jax.nn.sigmoid(parts[:, :size])
    cand = jnp.tanh(reset * parts[:, size:2 * size])    # act = tanh
    update = jax.nn.sigmoid(parts[:, 2 * size:] + update_bias)

    # Blend in f32: h + u * (cand - h)  ==  u*cand + (1-u)*h, one fewer vmul.
    h32 = h.astype(jnp.float32)
    out = h32 + update * (cand - h32)
    out_ref[...] = out.astype(out_ref.dtype)


def _round_up(a, b):
    return ((a + b - 1) // b) * b


def gru_cell_forward(inputs, state, params, *, update_bias=-1.0, row_tile=256,
                     matmul_dtype=jnp.bfloat16):
    """Pallas implementation of GRUCell.forward (norm=False, act=tanh).

    matmul_dtype: dtype for the MXU matmuls (weights are pre-cast once;
      accumulation and all gating math stay f32). Use None to keep the
      original parameter dtype (bit-tight f32 path).
    """
    wx, wh, b = params["wx"], params["wh"], params["b"]
    inp_size = wx.shape[0]
    size = wh.shape[0]
    assert inputs.shape[-1] == inp_size and state.shape[-1] == size
    assert inputs.shape[:-1] == state.shape[:-1]
    # NOTE: best lane layout when `size` (and inp_size) are multiples of 128;
    # other sizes are correct but incur vreg relayouts on the gate slices.

    if matmul_dtype is not None and wx.dtype != jnp.dtype(matmul_dtype):
        wx = wx.astype(matmul_dtype)
        wh = wh.astype(matmul_dtype)
    b = b.astype(jnp.float32)

    batch_shape = inputs.shape[:-1]
    m = 1
    for s in batch_shape:
        m *= int(s)
    x = inputs.reshape(m, inp_size)
    h = state.reshape(m, size)

    # Row-tile selection. No wrapper-side padding: Pallas masks the partial
    # final block's stores and every row is independent. A full-extent block
    # (tile == m) is always a legal block shape, so small batches get one slab.
    sublane = 16 if state.dtype == jnp.dtype(jnp.bfloat16) else 8
    tile = _round_up(max(int(row_tile), sublane), sublane)
    if m <= tile:
        tile = m
    grid = (pl.cdiv(m, tile),)

    wbytes = wx.dtype.itemsize
    xbytes = x.dtype.itemsize
    hbytes = h.dtype.itemsize
    obytes = state.dtype.itemsize

    # VMEM budget: double-buffered resident weights/bias + double-buffered
    # activation tiles, with headroom; never below the scoped default.
    vmem_est = (2 * ((inp_size + size) * 3 * size * wbytes + 3 * size * 4)
                + 2 * tile * (inp_size * xbytes + size * hbytes + size * obytes))
    vmem_limit = int(min(128 * 2**20, max(32 * 2**20, 1.5 * vmem_est + (4 << 20))))

    cost = pl.CostEstimate(
        flops=2 * m * (inp_size + size) * 3 * size,
        transcendentals=3 * m * size,
        bytes_accessed=(m * inp_size * xbytes + m * size * hbytes
                        + (inp_size + size) * 3 * size * wbytes
                        + 3 * size * 4 + m * size * obytes))

    kernel = functools.partial(_gru_cell_kernel, update_bias=float(update_bias))

    out = pl.pallas_call(
        kernel,
        out_shape=jax.ShapeDtypeStruct((m, size), state.dtype),
        grid_spec=pltpu.PrefetchScalarGridSpec(
            num_scalar_prefetch=0,
            grid=grid,
            in_specs=[
                pl.BlockSpec((tile, inp_size), lambda i: (i, 0)),      # inputs
                pl.BlockSpec((tile, size), lambda i: (i, 0)),          # state
                pl.BlockSpec((inp_size, 3 * size), lambda i: (0, 0)),  # W_x
                pl.BlockSpec((size, 3 * size), lambda i: (0, 0)),      # W_h
                pl.BlockSpec((1, 3 * size), lambda i: (0, 0)),         # bias
            ],
            out_specs=pl.BlockSpec((tile, size), lambda i: (i, 0)),
        ),
        compiler_params=pltpu.CompilerParams(
            dimension_semantics=("parallel",),
            vmem_limit_bytes=vmem_limit),
        cost_estimate=cost,
    )(x, h, wx, wh, b)

    return out.reshape(*batch_shape, size)


def init_params(key, inp_size, size):
    """Deterministic init matching nn.Linear(inp_size + size, 3 * size)."""
    fan_in = inp_size + size
    bound = 1.0 / jnp.sqrt(jnp.float32(fan_in))
    k1, k2 = jax.random.split(key, 2)
    w = jax.random.uniform(k1, (fan_in, 3 * size), jnp.float32, -bound, bound)
    b = jax.random.uniform(k2, (1, 3 * size), jnp.float32, -bound, bound)
    return {"wx": w[:inp_size], "wh": w[inp_size:], "b": b}


def gru_cell_reference(inputs, state, params, *, update_bias=-1.0):
    """Pure-JAX reference of the PyTorch forward (norm=False, act=tanh)."""
    x = jnp.concatenate([inputs, state], axis=-1)
    w = jnp.concatenate([params["wx"], params["wh"]], axis=0)
    parts = x @ w + params["b"][0]
    size = params["wh"].shape[0]
    reset = jax.nn.sigmoid(parts[..., :size])
    cand = jnp.tanh(reset * parts[..., size:2 * size])
    update = jax.nn.sigmoid(parts[..., 2 * size:] + update_bias)
    return update * cand + (1.0 - update) * state


if __name__ == "__main__":
    inp_size = 64
    size = 128
    seq, batch = 8, 2          # leading batch dims like PlaNet rollouts

    key = jax.random.PRNGKey(0)
    kp, kx, kh = jax.random.split(key, 3)

    params = init_params(kp, inp_size, size)
    inputs = jax.random.normal(kx, (seq, batch, inp_size), jnp.float32)
    state = jax.random.normal(kh, (seq, batch, size), jnp.float32)

    ref = gru_cell_reference(inputs, state, params)

    # 1) Bit-tight f32 matmul path.
    fwd_f32 = jax.jit(functools.partial(gru_cell_forward, params=params,
                                        matmul_dtype=None))
    out_f32 = jax.block_until_ready(fwd_f32(inputs, state))
    assert out_f32.shape == (seq, batch, size), out_f32.shape
    assert jnp.allclose(out_f32, ref, atol=1e-5, rtol=1e-5), (
        float(jnp.max(jnp.abs(out_f32 - ref))))

    # 2) Default bf16-matmul path (f32 accumulate + gating): loose tolerance.
    fwd = jax.jit(functools.partial(gru_cell_forward, params=params))
    out = jax.block_until_ready(fwd(inputs, state))
    assert out.shape == (seq, batch, size), out.shape
    assert jnp.allclose(out, ref, atol=3e-2, rtol=3e-2), (
        float(jnp.max(jnp.abs(out - ref))))

    # 3) Partial final block (m not a multiple of the row tile), no padding.
    m_odd = 40
    x2 = jax.random.normal(kx, (m_odd, inp_size), jnp.float32)
    h2 = jax.random.normal(kh, (m_odd, size), jnp.float32)
    out2 = jax.block_until_ready(
        gru_cell_forward(x2, h2, params, row_tile=16, matmul_dtype=None))
    ref2 = gru_cell_reference(x2, h2, params)
    assert jnp.allclose(out2, ref2, atol=1e-5, rtol=1e-5), (
        float(jnp.max(jnp.abs(out2 - ref2))))

    print("KERNEL_OK")
</pallas_src>

<mosaic_0001>
module attributes {stable_mosaic.version = 11 : i64} {
  func.func @_gru_cell_kernel(%arg0: i32, %arg1: memref<16x64xf32, #tpu.memory_space<vmem>>, %arg2: memref<16x128xf32, #tpu.memory_space<vmem>>, %arg3: memref<64x384xf32, #tpu.memory_space<vmem>>, %arg4: memref<128x384xf32, #tpu.memory_space<vmem>>, %arg5: memref<1x384xf32, #tpu.memory_space<vmem>>, %arg6: memref<16x128xf32, #tpu.memory_space<vmem>>) attributes {dimension_semantics = [#tpu.dimension_semantics<parallel>], iteration_bounds = array<i64: 1>, scalar_prefetch = 0 : i64, scratch_operands = 0 : i64, tpu.core_type = #tpu.core_type<tc>, window_params = [{transform_indices = @transform_0, window_bounds = array<i64: 16, 64>}, {transform_indices = @transform_1, window_bounds = array<i64: 16, 128>}, {pipeline_mode = #tpu.pipeline_mode<synchronous>, transform_indices = @transform_2, window_bounds = array<i64: 64, 384>}, {pipeline_mode = #tpu.pipeline_mode<synchronous>, transform_indices = @transform_3, window_bounds = array<i64: 128, 384>}, {pipeline_mode = #tpu.pipeline_mode<synchronous>, transform_indices = @transform_4, window_bounds = array<i64: 1, 384>}, {transform_indices = @transform_5, window_bounds = array<i64: 16, 128>}]} {
    %c0 = arith.constant 0 : index
    %c0_0 = arith.constant 0 : index
    %0 = vector.load %arg2[%c0, %c0_0] : memref<16x128xf32, #tpu.memory_space<vmem>>, vector<16x128xf32>
    %c0_1 = arith.constant 0 : index
    %c0_2 = arith.constant 0 : index
    %1 = vector.load %arg1[%c0_1, %c0_2] : memref<16x64xf32, #tpu.memory_space<vmem>>, vector<16x64xf32>
    %c0_3 = arith.constant 0 : index
    %c0_4 = arith.constant 0 : index
    %2 = vector.load %arg3[%c0_3, %c0_4] : memref<64x384xf32, #tpu.memory_space<vmem>>, vector<64x384xf32>
    %cst = arith.constant dense<0.000000e+00> : vector<16x384xf32>
    %3 = tpu.matmul %1, %2, %cst {dimension_numbers = #tpu.dot_dimension_numbers<[1], [0], [0], [1], [0, 0, 1, 1], [], []>} : vector<16x64xf32>, vector<64x384xf32>, vector<16x384xf32> -> vector<16x384xf32>
    %c0_5 = arith.constant 0 : index
    %c0_6 = arith.constant 0 : index
    %4 = vector.load %arg4[%c0_5, %c0_6] : memref<128x384xf32, #tpu.memory_space<vmem>>, vector<128x384xf32>
    %cst_7 = arith.constant dense<0.000000e+00> : vector<16x384xf32>
    %5 = tpu.matmul %0, %4, %cst_7 {dimension_numbers = #tpu.dot_dimension_numbers<[1], [0], [0], [1], [0, 0, 1, 1], [], []>} : vector<16x128xf32>, vector<128x384xf32>, vector<16x384xf32> -> vector<16x384xf32>
    %6 = arith.addf %3, %5 : vector<16x384xf32>
    %c0_8 = arith.constant 0 : index
    %c0_9 = arith.constant 0 : index
    %7 = vector.load %arg5[%c0_8, %c0_9] : memref<1x384xf32, #tpu.memory_space<vmem>>, vector<1x384xf32>
    %8 = vector.broadcast %7 : vector<1x384xf32> to vector<16x384xf32>
    %9 = arith.addf %6, %8 : vector<16x384xf32>
    %10 = vector.extract_strided_slice %9 {offsets = [0, 0], sizes = [16, 128], strides = [1, 1]} : vector<16x384xf32> to vector<16x128xf32>
    %11 = arith.negf %10 : vector<16x128xf32>
    %12 = math.exp %11 : vector<16x128xf32>
    %cst_10 = arith.constant 1.000000e+00 : f32
    %13 = vector.broadcast %cst_10 : f32 to vector<16x128xf32>
    %14 = arith.addf %13, %12 : vector<16x128xf32>
    %15 = arith.divf %13, %14 : vector<16x128xf32>
    %16 = vector.extract_strided_slice %9 {offsets = [0, 128], sizes = [16, 128], strides = [1, 1]} : vector<16x384xf32> to vector<16x128xf32>
    %17 = arith.mulf %15, %16 : vector<16x128xf32>
    %18 = math.tanh %17 : vector<16x128xf32>
    %19 = vector.extract_strided_slice %9 {offsets = [0, 256], sizes = [16, 128], strides = [1, 1]} : vector<16x384xf32> to vector<16x128xf32>
    %cst_11 = arith.constant -1.000000e+00 : f32
    %20 = vector.broadcast %cst_11 : f32 to vector<16x128xf32>
    %21 = arith.addf %19, %20 : vector<16x128xf32>
    %22 = arith.negf %21 : vector<16x128xf32>
    %23 = math.exp %22 : vector<16x128xf32>
    %cst_12 = arith.constant 1.000000e+00 : f32
    %24 = vector.broadcast %cst_12 : f32 to vector<16x128xf32>
    %25 = arith.addf %24, %23 : vector<16x128xf32>
    %26 = arith.divf %24, %25 : vector<16x128xf32>
    %27 = arith.subf %18, %0 : vector<16x128xf32>
    %28 = arith.mulf %26, %27 : vector<16x128xf32>
    %29 = arith.addf %0, %28 : vector<16x128xf32>
    %c0_13 = arith.constant 0 : index
    %c0_14 = arith.constant 0 : index
    %30 = vector.load %arg6[%c0_13, %c0_14] : memref<16x128xf32, #tpu.memory_space<vmem>>, vector<16x128xf32>
    tpu.vector_store %arg6[%c0_13, %c0_14], %29 {strides = array<i32>} : memref<16x128xf32, #tpu.memory_space<vmem>>, vector<16x128xf32>,
    return
  }
  func.func @transform_0(%arg0: i32) -> (i32, i32) {
    %c0_i32 = arith.constant 0 : i32
    %c0_i32_0 = arith.constant 0 : i32
    return %arg0, %c0_i32 : i32, i32
  }
  func.func @transform_1(%arg0: i32) -> (i32, i32) {
    %c0_i32 = arith.constant 0 : i32
    %c0_i32_0 = arith.constant 0 : i32
    return %arg0, %c0_i32 : i32, i32
  }
  func.func @transform_2(%arg0: i32) -> (i32, i32) {
    %c0_i32 = arith.constant 0 : i32
    %c0_i32_0 = arith.constant 0 : i32
    %c0_i32_1 = arith.constant 0 : i32
    return %c0_i32, %c0_i32_0 : i32, i32
  }
  func.func @transform_3(%arg0: i32) -> (i32, i32) {
    %c0_i32 = arith.constant 0 : i32
    %c0_i32_0 = arith.constant 0 : i32
    %c0_i32_1 = arith.constant 0 : i32
    return %c0_i32, %c0_i32_0 : i32, i32
  }
  func.func @transform_4(%arg0: i32) -> (i32, i32) {
    %c0_i32 = arith.constant 0 : i32
    %c0_i32_0 = arith.constant 0 : i32
    %c0_i32_1 = arith.constant 0 : i32
    return %c0_i32, %c0_i32_0 : i32, i32
  }
  func.func @transform_5(%arg0: i32) -> (i32, i32) {
    %c0_i32 = arith.constant 0 : i32
    %c0_i32_0 = arith.constant 0 : i32
    return %arg0, %c0_i32 : i32, i32
  }
}

</mosaic_0001>

<bundles_post_ra>
// kernel: gru_cell_forward.1
= control target key start
LH: loop header
LB: loop body
LE: loop exit
PB: predicated region body
PF: predicated region fallthrough
CT: control target
= control target key end

     0   :  { %10 = vsyncpa [#allocation3], 0  ;;  %s1022_s0 = inlined_call_operand.hbm [shape: f32[16,64], index: 0, kind: input, shape index: {}]   ;;  %s1023_s1 = inlined_call_operand.hbm [shape: f32[16,128], index: 1, kind: input, shape index: {}]   ;;  %s1024_s2 = inlined_call_operand.hbm [shape: f32[64,384], index: 2, kind: input, shape index: {}]   ;;  %s1025_s3 = inlined_call_operand.hbm [shape: f32[128,384], index: 3, kind: input, shape index: {}]   ;;  %s1026_s4 = inlined_call_operand.vmem [shape: f32[1,384], index: 4, kind: input, shape index: {}]   ;;  %s1027_s5 = inlined_call_operand.hbm [shape: f32[16,128], index: 5, kind: output, shape index: {}]  }
   0x1   :  { %11 = vsyncpa [#allocation6], 0 }
   0x2   :  { %12 = vsyncpa [#allocation9], 0 }
   0x3   :  { %13 = vsyncpa [#allocation4], 0  ;;  %s883_s18 = smov [#allocation5]   ;;  %s884_s20 = smov [#allocation2]  }
   0x4   :  { %s31_s19 = sshll.u32 %s883_s18, 4  ;;  %s19_s21 = sshll.u32 %s884_s20, 4  ;;  %s32_s19 = int_to_ptr.vmem [resolvable:$true] %s31_s19  ;;  %s923_s21 = int_to_ptr.vmem [resolvable:$true] %s19_s21 }
   0x5   :  { %s765_s24 = scalar_lea.hbm %s1023_s1, 256 }
   0x6   :  { %p766_p0 = scmp.ne.s32.totalorder %s1023_s1, %s765_s24  ;;  %p769_p1 = scmp.lt.u32.totalorder %s765_s24, %s1023_s1 }
   0x8   :  { %p771_p2 = pnand %p769_p1, %p766_p0 }
   0xa   :  { %774 = shalt.err (!%p771_p2)
}
   0xb   :  { %s775_s29 = scalar_lea.vmem %s32_s19, 256  ;;  %p780_p4 = scmp.lt.s32.totalorder %s32_s19, %s32_s19 }
   0xc   :  { %p776_p3 = scmp.ne.s32.totalorder %s32_s19, %s775_s29  ;;  %p781_p5 = scmp.lt.s32.totalorder %s775_s29, %s775_s29 }
   0xe   :  { %p782_p6 = por %p781_p5, %p780_p4 }
  0x10   :  { %p783_p7 = pnand %p782_p6, %p776_p3 }
  0x12   :  { %786 = shalt.err (!%p783_p7)
}
  0x13   :  { %s885_s30 = smov 128   ;;  %s886_s6 = smov 8  }
  0x14   :  { %37 = dma.hbm_to_vmem [thread:$0]  %s1023_s1, 256, %s32_s19, [#allocation6], %s885_s30, %s885_s30, %s886_s6  }
  0x15   :  { %s787_s11 = scalar_lea.hbm %s1022_s0, 256 }
  0x16   :  { %p788_p8 = scmp.ne.s32.totalorder %s1022_s0, %s787_s11  ;;  %p791_p9 = scmp.lt.u32.totalorder %s787_s11, %s1022_s0 }
  0x18   :  { %p793_p10 = pnand %p791_p9, %p788_p8 }
  0x1a   :  { %796 = shalt.err (!%p793_p10)
}
  0x1b   :  { %s797_s16 = scalar_lea.vmem %s923_s21, 256  ;;  %p802_p12 = scmp.lt.s32.totalorder %s923_s21, %s923_s21 }
  0x1c   :  { %p798_p11 = scmp.ne.s32.totalorder %s923_s21, %s797_s16  ;;  %p803_p13 = scmp.lt.s32.totalorder %s797_s16, %s797_s16 }
  0x1e   :  { %p804_p0 = por %p803_p13, %p802_p12 }
  0x20   :  { %p805_p1 = pnand %p804_p0, %p798_p11 }
  0x22   :  { %808 = shalt.err (!%p805_p1)
}
  0x23   :  { %25 = dma.hbm_to_vmem [thread:$0]  %s1022_s0, 256, %s923_s21, [#allocation3], %s885_s30, %s885_s30, %s886_s6  }
  0x24   :  { %s887_s18 = smov [#allocation7]   ;;  %s809_s23 = scalar_lea.hbm %s1024_s2, 3072 }
  0x25   :  { %s43_s19 = sshll.u32 %s887_s18, 4  ;;  %p810_p2 = scmp.ne.s32.totalorder %s1024_s2, %s809_s23  ;;  %s44_s19 = int_to_ptr.vmem [resolvable:$true] %s43_s19 }
  0x26   :  { %p813_p3 = scmp.lt.u32.totalorder %s809_s23, %s1024_s2 }
  0x28   :  { %p815_p4 = pnand %p813_p3, %p810_p2 }
  0x2a   :  { %818 = shalt.err (!%p815_p4)
}
  0x2b   :  { %s819_s28 = scalar_lea.vmem %s44_s19, 3072  ;;  %p824_p6 = scmp.lt.s32.totalorder %s44_s19, %s44_s19 }
  0x2c   :  { %p820_p5 = scmp.ne.s32.totalorder %s44_s19, %s819_s28  ;;  %p825_p7 = scmp.lt.s32.totalorder %s819_s28, %s819_s28 }
  0x2e   :  { %p826_p8 = por %p825_p7, %p824_p6 }
  0x30   :  { %p827_p9 = pnand %p826_p8, %p820_p5 }
  0x32   :  { %830 = shalt.err (!%p827_p9)
}
  0x33   :  { %s888_s0 = smov 384   ;;  %s889_s21 = smov 24  }
  0x34   :  { %49 = dma.hbm_to_vmem [thread:$0]  %s1024_s2, 3072, %s44_s19, [#allocation6], %s888_s0, %s888_s0, %s889_s21  }
  0x35   :  { %s890_s8 = smov [#allocation8]   ;;  %s831_s12 = scalar_lea.hbm %s1025_s3, 6144 }
  0x36   :  { %s55_s9 = sshll.u32 %s890_s8, 4  ;;  %p832_p10 = scmp.ne.s32.totalorder %s1025_s3, %s831_s12  ;;  %s56_s9 = int_to_ptr.vmem [resolvable:$true] %s55_s9 }
  0x37   :  { %p835_p11 = scmp.lt.u32.totalorder %s831_s12, %s1025_s3 }
  0x39   :  { %p837_p12 = pnand %p835_p11, %p832_p10 }
  0x3b   :  { %840 = shalt.err (!%p837_p12)
}
  0x3c   :  { %s841_s1 = scalar_lea.vmem %s56_s9, 6144  ;;  %p846_p0 = scmp.lt.s32.totalorder %s56_s9, %s56_s9 }
  0x3d   :  { %p842_p13 = scmp.ne.s32.totalorder %s56_s9, %s841_s1  ;;  %p847_p1 = scmp.lt.s32.totalorder %s841_s1, %s841_s1 }
  0x3f   :  { %p848_p2 = por %p847_p1, %p846_p0 }
  0x41   :  { %p849_p3 = pnand %p848_p2, %p842_p13 }
  0x43   :  { %852 = shalt.err (!%p849_p3)
}
  0x44   :  { %61 = dma.hbm_to_vmem [thread:$0]  %s1025_s3, 6144, %s56_s9, [#allocation9], %s888_s0, %s888_s0, %s889_s21  }
  0x45   :  { %875 = dma.done.wait [#allocation3], 256  }
  0x46   :  { %876 = vsyncadd [#allocation3], 4294967040 }
  0x47   :  { %877 = dma.done.wait [#allocation6], 3328  }
  0x48   :  { %878 = vsyncadd [#allocation6], 4294963968 }
  0x49   :  { %879 = dma.done.wait [#allocation9], 6144  }
  0x4a   :  { %880 = vsyncadd [#allocation9], 4294961152  ;;  %v891_v0 = vmov 0.0   ;;  %v105_v1 = vld [vmem:[#allocation8 + $0x8] sm:$0xff]  ;;  %v108_v2 = vld [vmem:[#allocation8 + $0x20] sm:$0xff]  ;;  %vm304_vm0 = vcmask 523264  }
  0x4b   :  { %216 = vmatprep.mubr.f32.mxu0 %v891_v0  ;;  %v106_v3 = vld [vmem:[#allocation8 + $0x10] sm:$0xff]  ;;  %v633_v4 = vpack.c.bf16 %v108_v2, %v105_v1  ;;  %v109_v5 = vld [vmem:[#allocation8 + $0x28] sm:$0xff]  ;;  %v104_v6 = vld [vmem:[#allocation8] sm:$0xff] }
  0x4c   :  { %v107_v7 = vld [vmem:[#allocation8 + $0x18] sm:$0xff]  ;;  %v665_v8 = vpack.c.bf16 %v109_v5, %v106_v3  ;;  %v114_v11 = vld [vmem:[#allocation8 + $0x50] sm:$0xff]  ;;  %v112_v12 = vld [vmem:[#allocation8 + $0x40] sm:$0xff] }
  0x4d   :  { %v635_v9 = vpack.c.bf16 %v107_v7, %v104_v6  ;;  %v111_v10 = vld [vmem:[#allocation8 + $0x38] sm:$0xff]  ;;  %634 = vmatprep.subr.bf16.mxu0 %v633_v4  ;;  %v110_v15 = vld [vmem:[#allocation8 + $0x30] sm:$0xff]  ;;  %v113_v16 = vld [vmem:[#allocation8 + $0x48] sm:$0xff] }
  0x4e   :  { %v637_v13 = vpack.c.bf16 %v114_v11, %v111_v10  ;;  %v115_v14 = vld [vmem:[#allocation8 + $0x58] sm:$0xff]  ;;  %666 = vmatprep.subr.bf16.mxu1 %v665_v8  ;;  %v639_v18 = vpack.c.bf16 %v113_v16, %v110_v15  ;;  %v117_v19 = vld [vmem:[#allocation8 + $0x68] sm:$0xff]  ;;  %v120_v20 = vld [vmem:[#allocation8 + $0x80] sm:$0xff] }
  0x4f   :  { %636 = vmatpush1.bf16.msra.mxu0 %v635_v9  ;;  %v669_v17 = vpack.c.bf16 %v115_v14, %v112_v12  ;;  %v118_v21 = vld [vmem:[#allocation8 + $0x70] sm:$0xff]  ;;  %668 = vmatpush3.bf16.msra.mxu1 %v665_v8  ;;  %v641_v22 = vpack.c.bf16 %v120_v20, %v117_v19  ;;  %v121_v23 = vld [vmem:[#allocation8 + $0x88] sm:$0xff]  ;;  %v116_v24 = vld [vmem:[#allocation8 + $0x60] sm:$0xff] }
  0x50   :  { %638 = vmatprep.subr.bf16.mxu0 %v637_v13  ;;  %v119_v25 = vld [vmem:[#allocation8 + $0x78] sm:$0xff]  ;;  %v673_v26 = vpack.c.bf16 %v121_v23, %v118_v21  ;;  %v126_v28 = vld [vmem:[#allocation8 + $0xb0] sm:$0xff]  ;;  %v124_v29 = vld [vmem:[#allocation8 + $0xa0] sm:$0xff] }
  0x51   :  { %670 = vmatprep.subr.bf16.mxu1 %v669_v17  ;;  %v123_v27 = vld [vmem:[#allocation8 + $0x98] sm:$0xff]  ;;  %v643_v31 = vpack.c.bf16 %v119_v25, %v116_v24  ;;  %v122_v33 = vld [vmem:[#allocation8 + $0x90] sm:$0xff]  ;;  %v125_v34 = vld [vmem:[#allocation8 + $0xa8] sm:$0xff] }
  0x52   :  { %v127_v30 = vld [vmem:[#allocation8 + $0xb8] sm:$0xff]  ;;  %v645_v32 = vpack.c.bf16 %v126_v28, %v123_v27  ;;  %v129_v36 = vld [vmem:[#allocation8 + $0xc8] sm:$0xff]  ;;  %v132_v37 = vld [vmem:[#allocation8 + $0xe0] sm:$0xff]  ;;  %v647_v40 = vpack.c.bf16 %v125_v34, %v122_v33 }
  0x53   :  { %640 = vmatpush1.bf16.msra.mxu0 %v639_v18  ;;  %672 = vmatpush3.bf16.msra.mxu1 %v669_v17  ;;  %v677_v35 = vpack.c.bf16 %v127_v30, %v124_v29  ;;  %v130_v38 = vld [vmem:[#allocation8 + $0xd0] sm:$0xff]  ;;  %v133_v39 = vld [vmem:[#allocation8 + $0xe8] sm:$0xff]  ;;  %v649_v41 = vpack.c.bf16 %v132_v37, %v129_v36  ;;  %v128_v42 = vld [vmem:[#allocation8 + $0xc0] sm:$0xff] }
  0x54   :  { %642 = vmatprep.subr.bf16.mxu0 %v641_v22  ;;  %674 = vmatprep.subr.bf16.mxu1 %v673_v26  ;;  %v131_v43 = vld [vmem:[#allocation8 + $0xd8] sm:$0xff]  ;;  %v681_v44 = vpack.c.bf16 %v133_v39, %v130_v38  ;;  %v138_v46 = vld [vmem:[#allocation8 + $0x110] sm:$0xff]  ;;  %v136_v47 = vld [vmem:[#allocation8 + $0x100] sm:$0xff] }
  0x55   :  { %v135_v45 = vld [vmem:[#allocation8 + $0xf8] sm:$0xff]  ;;  %v651_v49 = vpack.c.bf16 %v131_v43, %v128_v42  ;;  %v985_v50 = vld [vmem:[#allocation5] sm:$0xff]  ;;  %v137_v53 = vld [vmem:[#allocation8 + $0x108] sm:$0xff] }
  0x56   :  { %v139_v48 = vld [vmem:[#allocation8 + $0x118] sm:$0xff]  ;;  %v653_v51 = vpack.c.bf16 %v138_v46, %v135_v45  ;;  %v134_v52 = vld [vmem:[#allocation8 + $0xf0] sm:$0xff]  ;;  %v141_v55 = vld [vmem:[#allocation8 + $0x128] sm:$0xff]  ;;  %611 = vmatprep.mubr.f32.mxu1 %v985_v50 }
  0x57   :  { %644 = vmatpush1.bf16.msra.mxu0 %v643_v31  ;;  %676 = vmatpush3.bf16.msra.mxu1 %v673_v26  ;;  %v685_v54 = vpack.c.bf16 %v139_v48, %v136_v47  ;;  %v144_v56 = vld [vmem:[#allocation8 + $0x140] sm:$0xff]  ;;  %v142_v57 = vld [vmem:[#allocation8 + $0x130] sm:$0xff]  ;;  %v145_v58 = vld [vmem:[#allocation8 + $0x148] sm:$0xff]  ;;  %v655_v59 = vpack.c.bf16 %v137_v53, %v134_v52 }
  0x58   :  { %646 = vmatprep.subr.bf16.mxu0 %v645_v32  ;;  %678 = vmatprep.subr.bf16.mxu1 %v677_v35  ;;  %v657_v60 = vpack.c.bf16 %v144_v56, %v141_v55  ;;  %v140_v61 = vld [vmem:[#allocation8 + $0x120] sm:$0xff]  ;;  %v143_v62 = vld [vmem:[#allocation8 + $0x138] sm:$0xff]  ;;  %v689_v63 = vpack.c.bf16 %v145_v58, %v142_v57  ;;  %v150_v2 = vld [vmem:[#allocation8 + $0x170] sm:$0xff] }
  0x59   :  { %v147_v1 = vld [vmem:[#allocation8 + $0x158] sm:$0xff]  ;;  %v148_v3 = vld [vmem:[#allocation8 + $0x160] sm:$0xff]  ;;  %v659_v5 = vpack.c.bf16 %v143_v62, %v140_v61  ;;  %v146_v7 = vld [vmem:[#allocation8 + $0x150] sm:$0xff] }
  0x5a   :  { %v151_v4 = vld [vmem:[#allocation8 + $0x178] sm:$0xff]  ;;  %v661_v6 = vpack.c.bf16 %v150_v2, %v147_v1  ;;  %v149_v8 = vld [vmem:[#allocation8 + $0x168] sm:$0xff]  ;;  %v84_v11 = vld [vmem:[#allocation7 + $0x20] sm:$0xff] }
  0x5b   :  { %648 = vmatpush1.bf16.msra.mxu0 %v647_v40  ;;  %680 = vmatpush3.bf16.msra.mxu1 %v677_v35  ;;  %v693_v9 = vpack.c.bf16 %v151_v4, %v148_v3  ;;  %v81_v10 = vld [vmem:[#allocation7 + $0x8] sm:$0xff]  ;;  %v82_v12 = vld [vmem:[#allocation7 + $0x10] sm:$0xff]  ;;  %v663_v14 = vpack.c.bf16 %v149_v8, %v146_v7  ;;  %v80_v16 = vld [vmem:[#allocation7] sm:$0xff] }
  0x5c   :  { %650 = vmatprep.subr.bf16.mxu0 %v649_v41  ;;  %682 = vmatprep.subr.bf16.mxu1 %v681_v44  ;;  %v85_v13 = vld [vmem:[#allocation7 + $0x28] sm:$0xff]  ;;  %v697_v15 = vpack.c.bf16 %v84_v11, %v81_v10  ;;  %v83_v17 = vld [vmem:[#allocation7 + $0x18] sm:$0xff]  ;;  %v90_v20 = vld [vmem:[#allocation7 + $0x50] sm:$0xff] }
  0x5d   :  { %v713_v18 = vpack.c.bf16 %v85_v13, %v82_v12  ;;  %v87_v19 = vld [vmem:[#allocation7 + $0x38] sm:$0xff]  ;;  %v88_v21 = vld [vmem:[#allocation7 + $0x40] sm:$0xff]  ;;  %v699_v23 = vpack.c.bf16 %v83_v17, %v80_v16  ;;  %v86_v26 = vld [vmem:[#allocation7 + $0x30] sm:$0xff] }
  0x5e   :  { %v91_v22 = vld [vmem:[#allocation7 + $0x58] sm:$0xff]  ;;  %v701_v25 = vpack.c.bf16 %v90_v20, %v87_v19  ;;  %v89_v27 = vld [vmem:[#allocation7 + $0x48] sm:$0xff]  ;;  %v96_v30 = vld [vmem:[#allocation7 + $0x80] sm:$0xff] }
  0x5f   :  { %652 = vmatpush1.bf16.msra.mxu0 %v651_v49  ;;  %684 = vmatpush3.bf16.msra.mxu1 %v681_v44  ;;  %v988_v24 = vld [vmem:[#allocation5 + $0x8] sm:$0xff]  ;;  %v717_v28 = vpack.c.bf16 %v91_v22, %v88_v21  ;;  %v93_v29 = vld [vmem:[#allocation7 + $0x68] sm:$0xff]  ;;  %v94_v31 = vld [vmem:[#allocation7 + $0x70] sm:$0xff]  ;;  %v703_v33 = vpack.c.bf16 %v89_v27, %v86_v26 }
  0x60   :  { %654 = vmatprep.subr.bf16.mxu0 %v653_v51  ;;  %686 = vmatprep.subr.bf16.mxu1 %v685_v54  ;;  %v97_v32 = vld [vmem:[#allocation7 + $0x88] sm:$0xff]  ;;  %v78_v34 = vld [vmem:[#allocation2] sm:$0xff]  ;;  %v705_v35 = vpack.c.bf16 %v96_v30, %v93_v29  ;;  %v95_v37 = vld [vmem:[#allocation7 + $0x78] sm:$0xff]  ;;  %v465_v51 = vlaneseq }
  0x61   :  { %v92_v36 = vld [vmem:[#allocation7 + $0x60] sm:$0xff]  ;;  %v721_v38 = vpack.c.bf16 %v97_v32, %v94_v31  ;;  %v99_v39 = vld [vmem:[#allocation7 + $0x98] sm:$0xff]  ;;  %v102_v40 = vld [vmem:[#allocation7 + $0xb0] sm:$0xff] }
  0x62   :  { %v100_v41 = vld [vmem:[#allocation7 + $0xa0] sm:$0xff]  ;;  %v103_v42 = vld [vmem:[#allocation7 + $0xb8] sm:$0xff]  ;;  %v707_v43 = vpack.c.bf16 %v95_v37, %v92_v36  ;;  %v709_v44 = vpack.c.bf16 %v102_v40, %v99_v39  ;;  %v98_v45 = vld [vmem:[#allocation7 + $0x90] sm:$0xff]  ;;  %v466_v52 = vshrl.u32 %v465_v51, 7 }
  0x63   :  { %656 = vmatpush1.bf16.msra.mxu0 %v655_v59  ;;  %688 = vmatpush3.bf16.msra.mxu1 %v685_v54  ;;  %v101_v46 = vld [vmem:[#allocation7 + $0xa8] sm:$0xff]  ;;  %v725_v47 = vpack.c.bf16 %v103_v42, %v100_v41  ;;  %v463_v54 = vld [vmem:[%s1026_s4] sm:$0x7]  ;;  %s892_s4 = smov [#allocation10]  }
  0x64   :  { %658 = vmatprep.subr.bf16.mxu0 %v657_v60  ;;  %690 = vmatprep.subr.bf16.mxu1 %v689_v63  ;;  %v711_v48 = vpack.c.bf16 %v101_v46, %v98_v45  ;;  %v79_v49 = vld [vmem:[#allocation2 + $0x8] sm:$0xff]  ;;  %v467_v53 = vsub.s32 0, %v466_v52  ;;  %v475_v55 = vsub.s32 2, %v466_v52  ;;  %v471_v12 = vsub.s32 1, %v466_v52  ;;  %s529_s19 = sshll.u32 %s892_s4, 4  ;;  %s530_s19 = int_to_ptr.vmem [resolvable:$true] %s529_s19 }
  0x65   :  { %s853_s20 = scalar_lea.vmem %s530_s19, 256  ;;  %p858_p5 = scmp.lt.s32.totalorder %s530_s19, %s530_s19 }
  0x66   :  { %v468_v56 = vrot.slane %v463_v54, %v467_v53  ;;  %v476_v58 = vrot.slane %v463_v54, %v475_v55  ;;  %p854_p4 = scmp.ne.s32.totalorder %s530_s19, %s853_s20  ;;  %p859_p6 = scmp.lt.s32.totalorder %s853_s20, %s853_s20 }
  0x67   :  { %660 = vmatpush1.bf16.msra.mxu0 %v659_v5  ;;  %692 = vmatpush3.bf16.msra.mxu1 %v689_v63 }
  0x68   :  { %662 = vmatprep.subr.bf16.mxu0 %v661_v6  ;;  %694 = vmatprep.subr.bf16.mxu1 %v693_v9  ;;  %p860_p7 = por %p859_p6, %p858_p5 }
  0x6a   :  { %p861_p8 = pnand %p860_p7, %p854_p4 }
  0x6b   :  { %664 = vmatpush1.bf16.msra.mxu0 %v663_v14  ;;  %696 = vmatpush3.bf16.msra.mxu1 %v693_v9 }
  0x6c   :  { %698 = vmatprep.subr.bf16.mxu0 %v697_v15  ;;  %714 = vmatprep.subr.bf16.mxu1 %v713_v18  ;;  %v472_v15 = vrot.slane %v463_v54, %v471_v12 }
  0x6e   :  { %217 = vmatmul.mubr.f32.vlgmr.msra.gmra.mrb[0].mxu0 %v985_v50  ;;  %612 = vmatmul.mubr.f32.vlgmr.msra.gmra.mrb[0].mxu1 %v988_v24 }
  0x6f   :  { %700 = vmatpush1.bf16.msra.mxu0 %v699_v23  ;;  %716 = vmatpush3.bf16.msra.mxu1 %v713_v18 }
  0x70   :  { %702 = vmatprep.subr.bf16.mxu0 %v701_v25  ;;  %718 = vmatprep.subr.bf16.mxu1 %v717_v28 }
  0x71   :  { %222 = vmatprep.mubr.f32.mxu0 %v891_v0  ;;  %630 = vmatprep.mubr.msk.f32.mxu1 %vm304_vm0, %v78_v34 }
  0x72   :  { %223 = vmatmul.mubr.f32.gmra.mrb[2].mxu0 %v988_v24 }
  0x73   :  { %704 = vmatpush1.bf16.msra.mxu0 %v703_v33  ;;  %375 = vmatprep.mubr.f32.mxu0 %v891_v0 }
  0x74   :  { %720 = vmatpush3.bf16.msra.mxu1 %v717_v28  ;;  %706 = vmatprep.subr.bf16.mxu0 %v705_v35 }
  0x75   :  { %722 = vmatprep.subr.bf16.mxu1 %v721_v38 }
  0x77   :  { %708 = vmatpush1.bf16.msra.mxu0 %v707_v43 }
  0x78   :  { %724 = vmatpush3.bf16.msra.mxu1 %v721_v38  ;;  %710 = vmatprep.subr.bf16.mxu0 %v709_v44 }
  0x79   :  { %726 = vmatprep.subr.bf16.mxu1 %v725_v47 }
  0x7b   :  { %712 = vmatpush1.bf16.msra.mxu0 %v711_v48 }
  0x7c   :  { %728 = vmatpush3.bf16.msra.mxu1 %v725_v47 }
  0x7e   :  { %543 = vmatmul.mubr.msk.f32.vlgmr.msra.gmra.mrb[0].mxu0 %vm304_vm0, %v78_v34 }
  0x7f   :  { %631 = vmatmul.mubr.msk.f32.vlgmr.msra.gmra.mrb[0].mxu1 %vm304_vm0, %v79_v49  ;;  %381 = vmatprep.mubr.f32.mxu0 %v891_v0 }
  0x82   :  { %544 = vmatmul.mubr.msk.f32.gmra.mrb[2].mxu0 %vm304_vm0, %v79_v49 }
 0x151   :  { %v377_v57 = vpop.f32.mrb[0].mxu0 }
 0x152   :  { %v480_v59 = vadd.f32 %v468_v56, %v377_v57  ;;  %v632_v60 = vpop.f32.mrb[0].mxu1  ;;  %v379_v61 = vpop.f32.mrb[1].mxu0 }
 0x153   :  { %v454_v62 = vpop.f32.mrb[1].mxu1  ;;  %v485_v6 = vadd.f32 %v632_v60, %v476_v58  ;;  %v481_v17 = vadd.f32 %v472_v15, %v379_v61 }
 0x154   :  { %v547_v63 = vmul.f32 -1.442695, %v480_v59  ;;  %v482_v1 = vadd.f32 %v476_v58, %v454_v62 }
 0x155   :  { %v383_v0 = vpop.f32.mrb[2].mxu0  ;;  %v503_v8 = vadd.f32 -1.0, %v485_v6 }
 0x156   :  { %745 = vpow2.f32 %v547_v63  ;;  %v483_v2 = vadd.f32 %v468_v56, %v383_v0  ;;  %v385_v3 = vpop.f32.mrb[3].mxu0  ;;  %v502_v5 = vadd.f32 -1.0, %v482_v1 }
 0x157   :  { %v550_v11 = vmul.f32 -1.442695, %v503_v8  ;;  %v484_v22 = vadd.f32 %v472_v15, %v385_v3 }
 0x158   :  { %v548_v4 = vmul.f32 -1.442695, %v483_v2  ;;  %v549_v7 = vmul.f32 -1.442695, %v502_v5 }
 0x15a   :  { %747 = vpow2.f32 %v548_v4 }
 0x15b   :  { %749 = vpow2.f32 %v549_v7 }
 0x160   :  { %v746_v9 = vpop.eup %745 }
 0x161   :  { %v492_v10 = vadd.f32 1.0, %v746_v9 }
 0x163   :  { %751 = vrcp.f32 %v492_v10 }
 0x164   :  { %v748_v13 = vpop.eup %747  ;;  %753 = vpow2.f32 %v550_v11 }
 0x165   :  { %v493_v14 = vadd.f32 1.0, %v748_v13  ;;  %v750_v16 = vpop.eup %749 }
 0x166   :  { %v510_v20 = vadd.f32 1.0, %v750_v16 }
 0x167   :  { %755 = vrcp.f32 %v493_v14 }
 0x16d   :  { %v752_v18 = vpop.eup %751 }
 0x16e   :  { %v498_v19 = vmul.f32 %v752_v18, %v481_v17  ;;  %v754_v21 = vpop.eup %753 }
 0x16f   :  { %v511_v25 = vadd.f32 1.0, %v754_v21 }
 0x170   :  { %757 = vtanh.f32 %v498_v19 }
 0x171   :  { %v756_v23 = vpop.eup %755  ;;  %759 = vrcp.f32 %v510_v20 }
 0x172   :  { %v499_v26 = vmul.f32 %v756_v23, %v484_v22 }
 0x174   :  { %761 = vtanh.f32 %v499_v26 }
 0x175   :  { %763 = vrcp.f32 %v511_v25 }
 0x17a   :  { %v758_v27 = vpop.eup %757 }
 0x17b   :  { %v516_v28 = vsub.f32 %v758_v27, %v985_v50  ;;  %v760_v29 = vpop.eup %759 }
 0x17d   :  { %v518_v30 = vmul.f32 %v760_v29, %v516_v28 }
 0x17e   :  { %v762_v31 = vpop.eup %761 }
 0x17f   :  { %v520_v32 = vadd.f32 %v518_v30, %v985_v50  ;;  %v517_v33 = vsub.f32 %v762_v31, %v988_v24  ;;  %v764_v34 = vpop.eup %763 }
 0x181   :  { %522 = vst [vmem:[#allocation10] sm:$0xff] %v520_v32  ;;  %v519_v35 = vmul.f32 %v764_v34, %v517_v33 }
 0x183   :  { %v521_v36 = vadd.f32 %v519_v35, %v988_v24 }
 0x185   :  { %523 = vst [vmem:[#allocation10 + $0x8] sm:$0xff] %v521_v36 }
 0x186   :  { %864 = shalt.err (!%p861_p8)
}
 0x187   :  { %s865_s24 = scalar_lea.hbm %s1027_s5, 256 }
 0x188   :  { %p866_p9 = scmp.ne.s32.totalorder %s1027_s5, %s865_s24  ;;  %p869_p10 = scmp.lt.u32.totalorder %s865_s24, %s1027_s5 }
 0x18a   :  { %p871_p11 = pnand %p869_p10, %p866_p9 }
 0x18c   :  { %874 = shalt.err (!%p871_p11)
}
 0x18d   :  { %535 = dma.vmem_to_hbm [thread:$0]  %s530_s19, 256, %s1027_s5, [#allocation4], %s885_s30, %s885_s30, %s886_s6  }
 0x18e   :  { %881 = dma.done.wait [#allocation4], 256  }
 0x18f   :  { %882 = vsyncadd [#allocation4], 4294967040 }
 0x190   :  { %539 = vsyncpa [#allocation3], 1 }
 0x191   :  { %540 = vsyncpa [#allocation6], 1 }
 0x192   :  { %541 = vsyncpa [#allocation9], 1 }
 0x193   :  { %542 = vsyncpa [#allocation4], 1 }

</bundles_post_ra>
